<compile_context>
chip_gen: v7x
topology: tpu7x:2x2x1
jax: 0.10.0
libtpu: 0.0.40
codegen_flags: <defaults>
</compile_context>

<pallas_src>
import math

import jax
import jax.numpy as jnp
from jax.experimental import pallas as pl
from jax.experimental.pallas import tpu as pltpu

BN_EPS = 1e-5  # nn.BatchNorm2d default eps


def _round_up(a, b):
    return -(-a // b) * b


def _conv_stats_kernel(p_ref, w_ref, conv_ref, sum_ref, sq_ref):
    """Lane-dense conv tile + per-lane sum / sum-of-squares accumulation.

    p_ref:    [tm_bd, reps*9*Cin]  patches (bf16/f32)
    w_ref:    [reps*9*Cin, lane_w] block-diagonal conv weight
    conv_ref: [tm_bd, lane_w]      f32 conv intermediate (written to HBM)
    sum_ref/sq_ref: [8, lane_w]    resident f32 partial accumulators (per parallel slice)
    """
    conv = jnp.dot(p_ref[...], w_ref[...], preferred_element_type=jnp.float32)
    conv_ref[...] = conv

    rows, lanes = conv.shape
    c3 = conv.reshape(rows // 8, 8, lanes)     # (8, 128) vreg tiles stay intact (no relayout)
    s1 = jnp.sum(c3, axis=0)                   # [8, lane_w]  pure VPU vreg adds
    s2 = jnp.sum(c3 * c3, axis=0)              # [8, lane_w]

    @pl.when(pl.program_id(1) == 0)
    def _():
        sum_ref[...] = jnp.zeros_like(sum_ref)
        sq_ref[...] = jnp.zeros_like(sq_ref)

    sum_ref[...] = sum_ref[...] + s1
    sq_ref[...] = sq_ref[...] + s2


def _bn_relu_kernel(conv_ref, scale_ref, shift_ref, out_ref):
    """Fused BN affine + ReLU over the lane-dense conv intermediate."""
    y = conv_ref[...] * scale_ref[...] + shift_ref[...]
    out_ref[...] = jnp.maximum(y, 0.0).astype(out_ref.dtype)


def encoder_block(x_nchw, w_oihw, gamma, beta, *, block_rows=4096,
                  mxu_dtype=jnp.bfloat16):
    """EncoderBlock.forward.  x_nchw: [B, Cin, T, F] -> [B, Cout, T, F] (float32)."""
    B, Cin, T, F_ = x_nchw.shape
    Cout = w_oihw.shape[0]
    K = 9 * Cin
    M = B * T * F_

    # ---- lane-dense fold: lane l = j*Cout + c  (j = row-within-group, c = channel) ----
    if Cout % 128 == 0:
        reps = 1                                   # already lane-dense
    else:
        reps = math.lcm(Cout, 128) // Cout
        if reps * K * (reps * Cout) * 4 > (8 << 20):
            reps = 1   # TODO(synk): masked partial-lane stores for awkward Cout at huge Cin
    lane_w = reps * Cout

    # ---- row tile: multiple of 8*reps, large (amortize grid overhead), VMEM-capped ----
    g = 8 * reps
    itemsize = jnp.dtype(mxu_dtype).itemsize
    max_rows_vmem = max((((8 << 20) // (K * itemsize)) // g) * g, g)   # ~8 MiB patch buffer
    tm = max(min(_round_up(block_rows, g), _round_up(M, g), max_rows_vmem), g)
    tm_bd = tm // reps

    num_tiles = -(-M // tm)
    if num_tiles > 1 and num_tiles % 2:
        num_tiles += 1                             # even -> 2-way parallel stats (v7x megacore)
    n_par = 2 if num_tiles > 1 else 1
    tiles_per_par = num_tiles // n_par
    M_pad = num_tiles * tm
    rows_bd = M_pad // reps

    # ---- im2col in the wrapper: rows=(b,t,f), cols=(ky,kx,cin); zero-pad extra rows ----
    # TODO(synk): for large T*F, replace the HBM im2col (9x blow-up) with in-kernel halo
    # DMAs from padded NHWC x (memory_space=pl.ANY + pltpu.make_async_copy).
    x = jnp.transpose(x_nchw, (0, 2, 3, 1)).astype(jnp.float32)        # NHWC
    xpad = jnp.pad(x, ((0, 0), (1, 1), (1, 1), (0, 0)))
    patches = jnp.concatenate(
        [xpad[:, dy:dy + T, dx:dx + F_, :] for dy in range(3) for dx in range(3)],
        axis=-1).reshape(M, K)
    if M_pad > M:
        # Zero rows contribute 0 to the statistics and are sliced off at the end.
        patches = jnp.pad(patches, ((0, M_pad - M), (0, 0)))
    patches_bd = patches.astype(mxu_dtype).reshape(rows_bd, reps * K)  # metadata-only reshape

    # ---- block-diagonal weight: MXU emits the lane-dense tile directly (no relayout) ----
    # w_bd[j*K+k, l*Cout+c] = (j==l) * w[k, c]
    w_flat = jnp.transpose(w_oihw, (2, 3, 1, 0)).reshape(K, Cout).astype(jnp.float32)
    eye = jnp.eye(reps, dtype=jnp.float32)
    w_bd = jnp.einsum('jl,kc->jklc', eye, w_flat).reshape(reps * K, lane_w).astype(mxu_dtype)
    K_bd = reps * K

    # ---- pass 1: conv + per-channel statistics (single sweep over patches) ----
    flops1 = int(2 * rows_bd * K_bd * lane_w + 3 * rows_bd * lane_w)
    bytes1 = int(rows_bd * K_bd * itemsize + K_bd * lane_w * itemsize
                 + rows_bd * lane_w * 4 + 2 * n_par * 8 * lane_w * 4)
    conv_bd, psum, psq = pl.pallas_call(
        _conv_stats_kernel,
        out_shape=(jax.ShapeDtypeStruct((rows_bd, lane_w), jnp.float32),
                   jax.ShapeDtypeStruct((n_par * 8, lane_w), jnp.float32),
                   jax.ShapeDtypeStruct((n_par * 8, lane_w), jnp.float32)),
        grid=(n_par, tiles_per_par),
        in_specs=[
            pl.BlockSpec((tm_bd, K_bd), lambda p, i: (p * tiles_per_par + i, 0)),
            pl.BlockSpec((K_bd, lane_w), lambda p, i: (0, 0)),
        ],
        out_specs=[
            pl.BlockSpec((tm_bd, lane_w), lambda p, i: (p * tiles_per_par + i, 0)),
            pl.BlockSpec((8, lane_w), lambda p, i: (p, 0)),
            pl.BlockSpec((8, lane_w), lambda p, i: (p, 0)),
        ],
        compiler_params=pltpu.CompilerParams(
            dimension_semantics=("parallel", "arbitrary")),
        cost_estimate=pl.CostEstimate(flops=flops1, transcendentals=0,
                                      bytes_accessed=bytes1),
    )(patches_bd, w_bd)

    # ---- BN training-mode statistics -> fused affine (tiny, plain JAX, f32) ----
    per_lane_sum = psum.reshape(n_par, 8, lane_w).sum(axis=(0, 1))
    per_lane_sq = psq.reshape(n_par, 8, lane_w).sum(axis=(0, 1))
    ch_sum = per_lane_sum.reshape(reps, Cout).sum(axis=0)   # lane l -> channel l % Cout
    ch_sq = per_lane_sq.reshape(reps, Cout).sum(axis=0)
    n = float(M)                                   # padded zero rows contribute nothing
    mean = ch_sum / n
    # TODO(synk): E[x^2]-E[x]^2 in f32; use per-tile centered/Welford merging if conv outputs
    # ever have |mean| >> std.  BatchNorm2d running_mean/running_var (momentum buffers) are
    # not produced — the forward output does not depend on them.
    var = jnp.maximum(ch_sq / n - mean * mean, 0.0)  # biased variance (PyTorch train mode)
    inv = jax.lax.rsqrt(var + BN_EPS)
    scale = gamma.astype(jnp.float32) * inv
    shift = beta.astype(jnp.float32) - mean * scale
    scale_l = jnp.tile(scale, reps).reshape(1, lane_w)
    shift_l = jnp.tile(shift, reps).reshape(1, lane_w)

    # ---- pass 2: BN affine + ReLU over the conv intermediate (no patches re-read) ----
    flops2 = int(3 * rows_bd * lane_w)
    bytes2 = int(2 * rows_bd * lane_w * 4 + 2 * lane_w * 4)
    out_bd = pl.pallas_call(
        _bn_relu_kernel,
        out_shape=jax.ShapeDtypeStruct((rows_bd, lane_w), jnp.float32),
        grid=(num_tiles,),
        in_specs=[
            pl.BlockSpec((tm_bd, lane_w), lambda i: (i, 0)),
            pl.BlockSpec((1, lane_w), lambda i: (0, 0)),
            pl.BlockSpec((1, lane_w), lambda i: (0, 0)),
        ],
        out_specs=pl.BlockSpec((tm_bd, lane_w), lambda i: (i, 0)),
        compiler_params=pltpu.CompilerParams(dimension_semantics=("parallel",)),
        cost_estimate=pl.CostEstimate(flops=flops2, transcendentals=0,
                                      bytes_accessed=bytes2),
    )(conv_bd, scale_l, shift_l)

    # lane-dense (row-group, lane) order == flat (row, channel) order -> NHWC -> NCHW.
    out = out_bd.reshape(M_pad, Cout)[:M].reshape(B, T, F_, Cout)
    return jnp.transpose(out, (0, 3, 1, 2))


def reference(x_nchw, w_oihw, gamma, beta):
    """Pure-JAX reference of EncoderBlock.forward (fresh module -> BN training mode)."""
    y = jax.lax.conv_general_dilated(
        x_nchw, w_oihw, window_strides=(1, 1), padding=((1, 1), (1, 1)),
        dimension_numbers=("NCHW", "OIHW", "NCHW"))
    mean = jnp.mean(y, axis=(0, 2, 3), keepdims=True)
    var = jnp.var(y, axis=(0, 2, 3), keepdims=True)
    yn = (y - mean) * jax.lax.rsqrt(var + BN_EPS)
    yn = yn * gamma.reshape(1, -1, 1, 1) + beta.reshape(1, -1, 1, 1)
    return jnp.maximum(yn, 0.0)


if __name__ == "__main__":
    B, Cin, Cout, T, F_ = 2, 4, 8, 16, 16

    key = jax.random.PRNGKey(0)
    kx, kw = jax.random.split(key)

    # Deterministic params mirroring init_layer / init_bn:
    #   conv weight: xavier_uniform_, conv has no bias; bn: weight=1, bias=0.
    fan_in, fan_out = Cin * 9, Cout * 9
    bound = (6.0 / (fan_in + fan_out)) ** 0.5
    w_oihw = jax.random.uniform(kw, (Cout, Cin, 3, 3), jnp.float32, -bound, bound)
    gamma = jnp.ones((Cout,), jnp.float32)
    beta = jnp.zeros((Cout,), jnp.float32)

    x = jax.random.normal(kx, (B, Cin, T, F_), jnp.float32)

    ref = reference(x, w_oihw, gamma, beta)

    # Default production path: bf16 MXU stream (halves dominant HBM read), single big tile.
    out_bf16 = encoder_block(x, w_oihw, gamma, beta)
    jax.block_until_ready(out_bf16)
    assert out_bf16.shape == (B, Cout, T, F_)
    assert jnp.allclose(out_bf16, ref, atol=3e-2, rtol=3e-2), "bf16 path mismatch vs reference"

    # f32 path with small tiles: exercises multi-tile reduction + the 2-way parallel stats
    # axis, and holds a tight tolerance against the f32 reference.
    out_f32 = encoder_block(x, w_oihw, gamma, beta, block_rows=128, mxu_dtype=jnp.float32)
    jax.block_until_ready(out_f32)
    assert jnp.allclose(out_f32, ref, atol=2e-4, rtol=2e-4), "f32 path mismatch vs reference"

    print("KERNEL_OK")
</pallas_src>

<mosaic_0001>
module attributes {stable_mosaic.version = 11 : i64} {
  func.func @_conv_stats_kernel(%arg0: i32, %arg1: i32, %arg2: memref<32x576xbf16, #tpu.memory_space<vmem>>, %arg3: memref<576x128xbf16, #tpu.memory_space<vmem>>, %arg4: memref<32x128xf32, #tpu.memory_space<vmem>>, %arg5: memref<8x128xf32, #tpu.memory_space<vmem>>, %arg6: memref<8x128xf32, #tpu.memory_space<vmem>>) attributes {dimension_semantics = [#tpu.dimension_semantics<parallel>, #tpu.dimension_semantics<arbitrary>], iteration_bounds = array<i64: 1, 1>, scalar_prefetch = 0 : i64, scratch_operands = 0 : i64, tpu.core_type = #tpu.core_type<tc>, window_params = [{transform_indices = @transform_0, window_bounds = array<i64: 32, 576>}, {pipeline_mode = #tpu.pipeline_mode<synchronous>, transform_indices = @transform_1, window_bounds = array<i64: 576, 128>}, {transform_indices = @transform_2, window_bounds = array<i64: 32, 128>}, {transform_indices = @transform_3, window_bounds = array<i64: 8, 128>}, {transform_indices = @transform_4, window_bounds = array<i64: 8, 128>}]} {
    %c0 = arith.constant 0 : index
    %c0_0 = arith.constant 0 : index
    %0 = vector.load %arg2[%c0, %c0_0] : memref<32x576xbf16, #tpu.memory_space<vmem>>, vector<32x576xbf16>
    %c0_1 = arith.constant 0 : index
    %c0_2 = arith.constant 0 : index
    %1 = vector.load %arg3[%c0_1, %c0_2] : memref<576x128xbf16, #tpu.memory_space<vmem>>, vector<576x128xbf16>
    %cst = arith.constant dense<0.000000e+00> : vector<32x128xf32>
    %2 = tpu.matmul %0, %1, %cst {dimension_numbers = #tpu.dot_dimension_numbers<[1], [0], [0], [1], [0, 0, 1, 1], [], []>} : vector<32x576xbf16>, vector<576x128xbf16>, vector<32x128xf32> -> vector<32x128xf32>
    %c0_3 = arith.constant 0 : index
    %c0_4 = arith.constant 0 : index
    %3 = vector.load %arg4[%c0_3, %c0_4] : memref<32x128xf32, #tpu.memory_space<vmem>>, vector<32x128xf32>
    tpu.vector_store %arg4[%c0_3, %c0_4], %2 {strides = array<i32>} : memref<32x128xf32, #tpu.memory_space<vmem>>, vector<32x128xf32>,
    %4 = vector.shape_cast %2 : vector<32x128xf32> to vector<4x8x128xf32>
    %cst_5 = arith.constant dense<0.000000e+00> : vector<8x128xf32>
    %5 = vector.multi_reduction <add>, %4, %cst_5 [0] : vector<4x8x128xf32> to vector<8x128xf32>
    %6 = arith.mulf %4, %4 : vector<4x8x128xf32>
    %cst_6 = arith.constant dense<0.000000e+00> : vector<8x128xf32>
    %7 = vector.multi_reduction <add>, %6, %cst_6 [0] : vector<4x8x128xf32> to vector<8x128xf32>
    %c0_i32 = arith.constant 0 : i32
    %8 = arith.cmpi eq, %arg1, %c0_i32 : i32
    %9 = arith.extui %8 : i1 to i32
    %c0_i32_7 = arith.constant 0 : i32
    %10 = arith.cmpi ne, %9, %c0_i32_7 : i32
    scf.if %10 {
      %cst_16 = arith.constant 0.000000e+00 : f32
      %17 = vector.broadcast %cst_16 : f32 to vector<8x128xf32>
      %c0_17 = arith.constant 0 : index
      %c0_18 = arith.constant 0 : index
      %18 = vector.load %arg5[%c0_17, %c0_18] : memref<8x128xf32, #tpu.memory_space<vmem>>, vector<8x128xf32>
      tpu.vector_store %arg5[%c0_17, %c0_18], %17 {strides = array<i32>} : memref<8x128xf32, #tpu.memory_space<vmem>>, vector<8x128xf32>,
      %cst_19 = arith.constant 0.000000e+00 : f32
      %19 = vector.broadcast %cst_19 : f32 to vector<8x128xf32>
      %c0_20 = arith.constant 0 : index
      %c0_21 = arith.constant 0 : index
      %20 = vector.load %arg6[%c0_20, %c0_21] : memref<8x128xf32, #tpu.memory_space<vmem>>, vector<8x128xf32>
      tpu.vector_store %arg6[%c0_20, %c0_21], %19 {strides = array<i32>} : memref<8x128xf32, #tpu.memory_space<vmem>>, vector<8x128xf32>,
    } else {
    }
    %c0_8 = arith.constant 0 : index
    %c0_9 = arith.constant 0 : index
    %11 = vector.load %arg5[%c0_8, %c0_9] : memref<8x128xf32, #tpu.memory_space<vmem>>, vector<8x128xf32>
    %12 = arith.addf %11, %5 : vector<8x128xf32>
    %c0_10 = arith.constant 0 : index
    %c0_11 = arith.constant 0 : index
    %13 = vector.load %arg5[%c0_10, %c0_11] : memref<8x128xf32, #tpu.memory_space<vmem>>, vector<8x128xf32>
    tpu.vector_store %arg5[%c0_10, %c0_11], %12 {strides = array<i32>} : memref<8x128xf32, #tpu.memory_space<vmem>>, vector<8x128xf32>,
    %c0_12 = arith.constant 0 : index
    %c0_13 = arith.constant 0 : index
    %14 = vector.load %arg6[%c0_12, %c0_13] : memref<8x128xf32, #tpu.memory_space<vmem>>, vector<8x128xf32>
    %15 = arith.addf %14, %7 : vector<8x128xf32>
    %c0_14 = arith.constant 0 : index
    %c0_15 = arith.constant 0 : index
    %16 = vector.load %arg6[%c0_14, %c0_15] : memref<8x128xf32, #tpu.memory_space<vmem>>, vector<8x128xf32>
    tpu.vector_store %arg6[%c0_14, %c0_15], %15 {strides = array<i32>} : memref<8x128xf32, #tpu.memory_space<vmem>>, vector<8x128xf32>,
    return
  }
  func.func @transform_0(%arg0: i32, %arg1: i32) -> (i32, i32) {
    %c1_i32 = arith.constant 1 : i32
    %0 = arith.muli %arg0, %c1_i32 : i32
    %1 = arith.addi %0, %arg1 : i32
    %c0_i32 = arith.constant 0 : i32
    %c0_i32_0 = arith.constant 0 : i32
    return %1, %c0_i32 : i32, i32
  }
  func.func @transform_1(%arg0: i32, %arg1: i32) -> (i32, i32) {
    %c0_i32 = arith.constant 0 : i32
    %c0_i32_0 = arith.constant 0 : i32
    %c0_i32_1 = arith.constant 0 : i32
    return %c0_i32, %c0_i32_0 : i32, i32
  }
  func.func @transform_2(%arg0: i32, %arg1: i32) -> (i32, i32) {
    %c1_i32 = arith.constant 1 : i32
    %0 = arith.muli %arg0, %c1_i32 : i32
    %1 = arith.addi %0, %arg1 : i32
    %c0_i32 = arith.constant 0 : i32
    %c0_i32_0 = arith.constant 0 : i32
    return %1, %c0_i32 : i32, i32
  }
  func.func @transform_3(%arg0: i32, %arg1: i32) -> (i32, i32) {
    %c0_i32 = arith.constant 0 : i32
    %c0_i32_0 = arith.constant 0 : i32
    return %arg0, %c0_i32 : i32, i32
  }
  func.func @transform_4(%arg0: i32, %arg1: i32) -> (i32, i32) {
    %c0_i32 = arith.constant 0 : i32
    %c0_i32_0 = arith.constant 0 : i32
    return %arg0, %c0_i32 : i32, i32
  }
}

</mosaic_0001>

<bundles_post_ra>
// kernel: tpu_custom_call.1
= control target key start
LH: loop header
LB: loop body
LE: loop exit
PB: predicated region body
PF: predicated region fallthrough
CT: control target
= control target key end

     0   :  { %10 = vsyncpa [#allocation3], 0  ;;  %s1031_s0 = inlined_call_operand.hbm [shape: bf16[32,576], index: 0, kind: input, shape index: {}]   ;;  %s1032_s1 = inlined_call_operand.hbm [shape: bf16[576,128], index: 1, kind: input, shape index: {}]   ;;  %s1033_s2 = inlined_call_operand.hbm [shape: f32[32,128], index: 2, kind: output, shape index: {0}]   ;;  %s1034_s3 = inlined_call_operand.hbm [shape: f32[8,128], index: 3, kind: output, shape index: {1}]   ;;  %s1035_s4 = inlined_call_operand.hbm [shape: f32[8,128], index: 4, kind: output, shape index: {2}]  }
   0x1   :  { %11 = vsyncpa [#allocation6], 0 }
   0x2   :  { %12 = vsyncpa [#allocation4], 0 }
   0x3   :  { %13 = vsyncpa [#allocation9], 0  ;;  %s935_s15 = smov [#allocation2]   ;;  %s817_s19 = scalar_lea.hbm %s1031_s0, 1280 }
   0x4   :  { %s24_s16 = sshll.u32 %s935_s15, 4  ;;  %p818_p0 = scmp.ne.s32.totalorder %s1031_s0, %s817_s19  ;;  %s25_s16 = int_to_ptr.vmem [resolvable:$true] %s24_s16 }
   0x5   :  { %p821_p1 = scmp.lt.u32.totalorder %s817_s19, %s1031_s0 }
   0x7   :  { %p823_p2 = pnand %p821_p1, %p818_p0 }
   0x9   :  { %826 = shalt.err (!%p823_p2)
}
   0xa   :  { %s827_s24 = scalar_lea.vmem %s25_s16, 1280  ;;  %p832_p4 = scmp.lt.s32.totalorder %s25_s16, %s25_s16 }
   0xb   :  { %p828_p3 = scmp.ne.s32.totalorder %s25_s16, %s827_s24  ;;  %p833_p5 = scmp.lt.s32.totalorder %s827_s24, %s827_s24 }
   0xd   :  { %p834_p6 = por %p833_p5, %p832_p4 }
   0xf   :  { %p835_p7 = pnand %p834_p6, %p828_p3 }
  0x11   :  { %838 = shalt.err (!%p835_p7)
}
  0x12   :  { %s936_s25 = smov 320   ;;  %s937_s26 = smov 20  }
  0x13   :  { %30 = dma.hbm_to_vmem [thread:$0]  %s1031_s0, 1280, %s25_s16, [#allocation3], %s936_s25, %s936_s25, %s937_s26  }
  0x14   :  { %s938_s29 = smov [#allocation5]   ;;  %s839_s7 = scalar_lea.hbm %s1032_s1, 4608 }
  0x15   :  { %s36_s30 = sshll.u32 %s938_s29, 4  ;;  %p840_p8 = scmp.ne.s32.totalorder %s1032_s1, %s839_s7  ;;  %s37_s30 = int_to_ptr.vmem [resolvable:$true] %s36_s30 }
  0x16   :  { %p843_p9 = scmp.lt.u32.totalorder %s839_s7, %s1032_s1 }
  0x18   :  { %p845_p10 = pnand %p843_p9, %p840_p8 }
  0x1a   :  { %848 = shalt.err (!%p845_p10)
}
  0x1b   :  { %s849_s12 = scalar_lea.vmem %s37_s30, 4608  ;;  %p854_p12 = scmp.lt.s32.totalorder %s37_s30, %s37_s30 }
  0x1c   :  { %p850_p11 = scmp.ne.s32.totalorder %s37_s30, %s849_s12  ;;  %p855_p13 = scmp.lt.s32.totalorder %s849_s12, %s849_s12 }
  0x1e   :  { %p856_p0 = por %p855_p13, %p854_p12 }
  0x20   :  { %p857_p1 = pnand %p856_p0, %p850_p11 }
  0x22   :  { %860 = shalt.err (!%p857_p1)
}
  0x23   :  { %s939_s0 = smov 64   ;;  %s940_s13 = smov 4  }
  0x24   :  { %42 = dma.hbm_to_vmem [thread:$0]  %s1032_s1, 4608, %s37_s30, [#allocation6], %s939_s0, %s939_s0, %s940_s13  }
  0x25   :  { %927 = dma.done.wait [#allocation3], 1280  }
  0x26   :  { %928 = vsyncadd [#allocation3], 4294966016 }
  0x27   :  { %929 = dma.done.wait [#allocation6], 4608  }
  0x28   :  { %930 = vsyncadd [#allocation6], 4294962688  ;;  %v767_v0 = vld [vmem:[#allocation5 + $0x40] sm:$0xff]   ;;  %v771_v4 = vld [vmem:[#allocation5 + $0x48] sm:$0xff]   ;;  %vm404_vm0 = vcmask 523264   ;;  %s941_s1 = smov [#allocation7]  }
  0x29   :  { %v768_v1 = vld [vmem:[#allocation5 + $0xc0] sm:$0xff]   ;;  %681 = vmatprep.subr.bf16.mxu0 %v767_v0  ;;  %v772_v5 = vld [vmem:[#allocation5 + $0xc8] sm:$0xff]   ;;  %v775_v8 = vld [vmem:[#allocation5 + $0x50] sm:$0xff]   ;;  %s593_s16 = sshll.u32 %s941_s1, 4  ;;  %s594_s16 = int_to_ptr.vmem [resolvable:$true] %s593_s16 }
  0x2a   :  { %v769_v2 = vld [vmem:[#allocation5] sm:$0xff]   ;;  %709 = vmatprep.subr.bf16.mxu1 %v768_v1  ;;  %v773_v6 = vld [vmem:[#allocation5 + $0x8] sm:$0xff]   ;;  %v776_v9 = vld [vmem:[#allocation5 + $0xd0] sm:$0xff]   ;;  %s861_s17 = scalar_lea.vmem %s594_s16, 512  ;;  %p866_p3 = scmp.lt.s32.totalorder %s594_s16, %s594_s16 }
  0x2b   :  { %v770_v3 = vld [vmem:[#allocation5 + $0x80] sm:$0xff]   ;;  %682 = vmatpush3.bf16.msra.mxu0 %v769_v2  ;;  %v774_v7 = vld [vmem:[#allocation5 + $0x88] sm:$0xff]   ;;  %v777_v10 = vld [vmem:[#allocation5 + $0x10] sm:$0xff]   ;;  %p862_p2 = scmp.ne.s32.totalorder %s594_s16, %s861_s17  ;;  %p867_p4 = scmp.lt.s32.totalorder %s861_s17, %s861_s17 }
  0x2c   :  { %710 = vmatpush3.bf16.msra.mxu1 %v770_v3  ;;  %683 = vmatprep.subr.bf16.mxu0 %v771_v4  ;;  %v778_v11 = vld [vmem:[#allocation5 + $0x90] sm:$0xff]   ;;  %v779_v12 = vld [vmem:[#allocation5 + $0x58] sm:$0xff]   ;;  %v783_v16 = vld [vmem:[#allocation5 + $0x60] sm:$0xff]  }
  0x2d   :  { %711 = vmatprep.subr.bf16.mxu1 %v772_v5  ;;  %v780_v13 = vld [vmem:[#allocation5 + $0xd8] sm:$0xff]   ;;  %v784_v17 = vld [vmem:[#allocation5 + $0xe0] sm:$0xff]   ;;  %v787_v20 = vld [vmem:[#allocation5 + $0x68] sm:$0xff]   ;;  %p868_p5 = por %p867_p4, %p866_p3 }
  0x2e   :  { %v781_v14 = vld [vmem:[#allocation5 + $0x18] sm:$0xff]   ;;  %v785_v18 = vld [vmem:[#allocation5 + $0x20] sm:$0xff]   ;;  %v788_v21 = vld [vmem:[#allocation5 + $0xe8] sm:$0xff]  }
  0x2f   :  { %684 = vmatpush3.bf16.msra.mxu0 %v773_v6  ;;  %v782_v15 = vld [vmem:[#allocation5 + $0x98] sm:$0xff]   ;;  %v786_v19 = vld [vmem:[#allocation5 + $0xa0] sm:$0xff]   ;;  %v789_v22 = vld [vmem:[#allocation5 + $0x28] sm:$0xff]   ;;  %p869_p6 = pnand %p868_p5, %p862_p2 }
  0x30   :  { %712 = vmatpush3.bf16.msra.mxu1 %v774_v7  ;;  %685 = vmatprep.subr.bf16.mxu0 %v775_v8  ;;  %v790_v23 = vld [vmem:[#allocation5 + $0xa8] sm:$0xff]   ;;  %v791_v24 = vld [vmem:[#allocation5 + $0x70] sm:$0xff]   ;;  %v795_v28 = vld [vmem:[#allocation5 + $0x78] sm:$0xff]  }
  0x31   :  { %713 = vmatprep.subr.bf16.mxu1 %v776_v9  ;;  %v792_v25 = vld [vmem:[#allocation5 + $0xf0] sm:$0xff]   ;;  %v796_v29 = vld [vmem:[#allocation5 + $0xf8] sm:$0xff]   ;;  %v805_v36 = vld [vmem:[#allocation5 + $0x100] sm:$0xff]  }
  0x32   :  { %v793_v26 = vld [vmem:[#allocation5 + $0x30] sm:$0xff]   ;;  %v797_v30 = vld [vmem:[#allocation5 + $0x38] sm:$0xff]   ;;  %v806_v37 = vld [vmem:[#allocation5 + $0x108] sm:$0xff]  }
  0x33   :  { %686 = vmatpush3.bf16.msra.mxu0 %v777_v10  ;;  %v794_v27 = vld [vmem:[#allocation5 + $0xb0] sm:$0xff]   ;;  %v798_v31 = vld [vmem:[#allocation5 + $0xb8] sm:$0xff]  }
  0x34   :  { %714 = vmatpush3.bf16.msra.mxu1 %v778_v11  ;;  %687 = vmatprep.subr.bf16.mxu0 %v779_v12  ;;  %v799_v32 = vld [vmem:[#allocation2] ss:$20 sps:$4 sm:$0xff]   ;;  %v801_v33 = vld [vmem:[#allocation2 + $0x4] ss:$20 sps:$4 sm:$0xff]   ;;  %v802_v34 = vld [vmem:[#allocation2 + $0x8] ss:$20 sps:$4 sm:$0xff]  }
  0x35   :  { %715 = vmatprep.subr.bf16.mxu1 %v780_v13  ;;  %v804_v35 = vld [vmem:[#allocation2 + $0xc] ss:$20 sps:$4 sm:$0xff]   ;;  %443 = vmatprep.mubr.bf16.mxu0 %v801_v33  ;;  %v809_v39 = vld [vmem:[#allocation2 + $0x34] ss:$20 sps:$4 sm:$0xff]   ;;  %v812_v42 = vld [vmem:[#allocation2 + $0x30] ss:$20 sps:$4 sm:$0xff]  }
  0x36   :  { %492 = vmatprep.mubr.bf16.mxu1 %v804_v35  ;;  %v807_v38 = vld [vmem:[#allocation2 + $0x2c] ss:$20 sps:$4 sm:$0xff]   ;;  %v811_v40 = vld [vmem:[#allocation2 + $0x28] ss:$20 sps:$4 sm:$0xff]   ;;  %v815_v43 = vld [vmem:[#allocation2 + $0x10] ss:$20 sps:$4 sm:$0xff]  }
  0x37   :  { %688 = vmatpush3.bf16.msra.mxu0 %v781_v14  ;;  %v813_v41 = vld [vmem:[#allocation5 + $0x110] sm:$0xff]   ;;  %v814_v44 = vld [vmem:[#allocation5 + $0x118] sm:$0xff]  }
  0x38   :  { %716 = vmatpush3.bf16.msra.mxu1 %v782_v15  ;;  %689 = vmatprep.subr.bf16.mxu0 %v783_v16  ;;  %v816_v45 = vld [vmem:[#allocation2 + $0x38] ss:$20 sps:$4 sm:$0xff]  }
  0x39   :  { %717 = vmatprep.subr.bf16.mxu1 %v784_v17 }
  0x3b   :  { %690 = vmatpush3.bf16.msra.mxu0 %v785_v18 }
  0x3c   :  { %718 = vmatpush3.bf16.msra.mxu1 %v786_v19  ;;  %691 = vmatprep.subr.bf16.mxu0 %v787_v20 }
  0x3d   :  { %719 = vmatprep.subr.bf16.mxu1 %v788_v21 }
  0x3f   :  { %692 = vmatpush3.bf16.msra.mxu0 %v789_v22 }
  0x40   :  { %720 = vmatpush3.bf16.msra.mxu1 %v790_v23  ;;  %693 = vmatprep.subr.bf16.mxu0 %v791_v24 }
  0x41   :  { %721 = vmatprep.subr.bf16.mxu1 %v792_v25 }
  0x43   :  { %694 = vmatpush3.bf16.msra.mxu0 %v793_v26 }
  0x44   :  { %722 = vmatpush3.bf16.msra.mxu1 %v794_v27  ;;  %695 = vmatprep.subr.bf16.mxu0 %v795_v28 }
  0x45   :  { %723 = vmatprep.subr.bf16.mxu1 %v796_v29 }
  0x47   :  { %696 = vmatpush3.bf16.msra.mxu0 %v797_v30 }
  0x48   :  { %724 = vmatpush3.bf16.msra.mxu1 %v798_v31  ;;  %743 = vmatprep.subr.bf16.mxu0 %v805_v36 }
  0x4a   :  { %444 = vmatmul.mubr.bf16.vlgmr.msra.gmra.mrb[0].mxu0 %v799_v32 }
  0x4b   :  { %493 = vmatmul.mubr.bf16.vlgmr.msra.gmra.mrb[0].mxu1 %v802_v34  ;;  %744 = vmatpush3.bf16.msra.mxu0 %v805_v36 }
  0x4c   :  { %745 = vmatprep.subr.bf16.mxu0 %v806_v37  ;;  %451 = vmatprep.mubr.bf16.mxu0 %v807_v38 }
  0x4d   :  { %500 = vmatprep.mubr.bf16.mxu1 %v809_v39 }
  0x4f   :  { %746 = vmatpush3.bf16.msra.mxu0 %v806_v37 }
  0x50   :  { %747 = vmatprep.subr.bf16.mxu0 %v813_v41 }
  0x52   :  { %452 = vmatmul.mubr.bf16.gmra.mrb[4].mxu0 %v811_v40 }
  0x53   :  { %501 = vmatmul.mubr.bf16.gmra.mrb[4].mxu1 %v812_v42  ;;  %751 = vmatprep.mubr.msk.bf16.mxu0 %vm404_vm0, %v815_v43 }
  0x54   :  { %748 = vmatpush3.bf16.msra.mxu0 %v813_v41 }
  0x55   :  { %749 = vmatprep.subr.bf16.mxu0 %v814_v44 }
  0x58   :  { %750 = vmatpush3.bf16.msra.mxu0 %v814_v44 }
  0x5b   :  { %752 = vmatmul.mubr.msk.bf16.vlgmr.msra.gmra.mrb[8].mxu0 %vm404_vm0, %v816_v45 }
 0x11d   :  { %v697_v46 = vpop.f32.mrb[0].mxu0 }
 0x11e   :  { %v725_v47 = vpop.f32.mrb[0].mxu1  ;;  %v698_v48 = vpop.f32.mrb[1].mxu0 }
 0x11f   :  { %v699_v49 = vadd.f32 %v698_v48, %v697_v46  ;;  %v726_v50 = vpop.f32.mrb[1].mxu1  ;;  %v700_v51 = vpop.f32.mrb[2].mxu0 }
 0x120   :  { %v727_v52 = vadd.f32 %v726_v50, %v725_v47  ;;  %v728_v53 = vpop.f32.mrb[2].mxu1  ;;  %v701_v54 = vpop.f32.mrb[3].mxu0 }
 0x121   :  { %v702_v55 = vadd.f32 %v701_v54, %v700_v51  ;;  %v729_v56 = vpop.f32.mrb[3].mxu1 }
 0x122   :  { %v730_v57 = vadd.f32 %v729_v56, %v728_v53  ;;  %v495_v58 = vadd.f32 %v727_v52, %v699_v49 }
 0x124   :  { %v498_v59 = vadd.f32 %v730_v57, %v702_v55 }
 0x125   :  { %v703_v60 = vpop.f32.mrb[4].mxu0 }
 0x126   :  { %v731_v61 = vpop.f32.mrb[4].mxu1  ;;  %v704_v62 = vpop.f32.mrb[5].mxu0 }
 0x127   :  { %v705_v63 = vadd.f32 %v704_v62, %v703_v60  ;;  %v732_v0 = vpop.f32.mrb[5].mxu1  ;;  %v706_v1 = vpop.f32.mrb[6].mxu0 }
 0x128   :  { %v733_v2 = vadd.f32 %v732_v0, %v731_v61  ;;  %v734_v3 = vpop.f32.mrb[6].mxu1  ;;  %v707_v4 = vpop.f32.mrb[7].mxu0 }
 0x129   :  { %v708_v5 = vadd.f32 %v707_v4, %v706_v1  ;;  %v735_v6 = vpop.f32.mrb[7].mxu1 }
 0x12a   :  { %v736_v7 = vadd.f32 %v735_v6, %v734_v3  ;;  %v503_v8 = vadd.f32 %v733_v2, %v705_v63 }
 0x12c   :  { %v506_v9 = vadd.f32 %v736_v7, %v708_v5 }
 0x12e   :  { %v753_v10 = vpop.f32.mrb[8].mxu0 }
 0x12f   :  { %v552_v11 = vadd.f32 %v753_v10, %v503_v8  ;;  %v543_v12 = vpop.f32.mrb[9].mxu0 }
 0x130   :  { %v544_v13 = vadd.f32 %v543_v12, %v495_v58  ;;  %v754_v14 = vpop.f32.mrb[10].mxu0 }
 0x131   :  { %560 = vst [vmem:[#allocation7 + $0x10] sm:$0xff] %v552_v11  ;;  %v555_v15 = vadd.f32 %v754_v14, %v506_v9  ;;  %v546_v16 = vpop.f32.mrb[11].mxu0 }
 0x132   :  { %558 = vst [vmem:[#allocation7] sm:$0xff] %v544_v13  ;;  %v547_v17 = vadd.f32 %v546_v16, %v498_v59  ;;  %v565_v18 = vmul.f32 %v544_v13, %v544_v13 }
 0x133   :  { %561 = vst [vmem:[#allocation7 + $0x18] sm:$0xff] %v555_v15 }
 0x134   :  { %559 = vst [vmem:[#allocation7 + $0x8] sm:$0xff] %v547_v17  ;;  %v562_v19 = vadd.f32 %v547_v17, %v544_v13  ;;  %v566_v20 = vmul.f32 %v547_v17, %v547_v17 }
 0x135   :  { %872 = shalt.err (!%p869_p6)
}
 0x136   :  { %s873_s20 = scalar_lea.hbm %s1033_s2, 512 }
 0x137   :  { %p874_p7 = scmp.ne.s32.totalorder %s1033_s2, %s873_s20  ;;  %p877_p8 = scmp.lt.u32.totalorder %s873_s20, %s1033_s2 }
 0x139   :  { %p879_p9 = pnand %p877_p8, %p874_p7 }
 0x13b   :  { %882 = shalt.err (!%p879_p9)
}
 0x13c   :  { %s942_s25 = smov 128   ;;  %s943_s26 = smov 8   ;;  %v567_v21 = vmul.f32 %v552_v11, %v552_v11  ;;  %v563_v22 = vadd.f32 %v562_v19, %v552_v11  ;;  %v569_v23 = vadd.f32 %v566_v20, %v565_v18  ;;  %v568_v24 = vmul.f32 %v555_v15, %v555_v15 }
 0x13d   :  { %599 = dma.vmem_to_hbm [thread:$0]  %s594_s16, 512, %s1033_s2, [#allocation4], %s942_s25, %s942_s25, %s943_s26  }
 0x13e   :  { %s944_s29 = smov [#allocation8]   ;;  %v570_v25 = vadd.f32 %v569_v23, %v567_v21  ;;  %v564_v26 = vadd.f32 %v563_v22, %v555_v15  ;;  %s945_s5 = smov [#allocation10]  }
 0x13f   :  { %s606_s30 = sshll.u32 %s944_s29, 4  ;;  %s616_s6 = sshll.u32 %s945_s5, 4  ;;  %s607_s30 = int_to_ptr.vmem [resolvable:$true] %s606_s30  ;;  %s617_s6 = int_to_ptr.vmem [resolvable:$true] %s616_s6 }
 0x140   :  { %v571_v27 = vadd.f32 %v570_v25, %v568_v24  ;;  %580 = vst [vmem:[#allocation8] sm:$0xff] %v564_v26  ;;  %s883_s7 = scalar_lea.vmem %s607_s30, 128  ;;  %p888_p11 = scmp.lt.s32.totalorder %s607_s30, %s607_s30 }
 0x141   :  { %p884_p10 = scmp.ne.s32.totalorder %s607_s30, %s883_s7  ;;  %p889_p12 = scmp.lt.s32.totalorder %s883_s7, %s883_s7 }
 0x143   :  { %p890_p13 = por %p889_p12, %p888_p11 }
 0x145   :  { %p891_p0 = pnand %p890_p13, %p884_p10 }
 0x147   :  { %894 = shalt.err (!%p891_p0)
}
 0x148   :  { %s895_s9 = scalar_lea.hbm %s1034_s3, 128 }
 0x149   :  { %p896_p1 = scmp.ne.s32.totalorder %s1034_s3, %s895_s9  ;;  %p899_p2 = scmp.lt.u32.totalorder %s895_s9, %s1034_s3 }
 0x14b   :  { %p901_p3 = pnand %p899_p2, %p896_p1 }
 0x14d   :  { %904 = shalt.err (!%p901_p3)
}
 0x14e   :  { %609 = dma.vmem_to_hbm [thread:$0]  %s607_s30, 128, %s1034_s3, [#allocation9]   ;;  %583 = vst [vmem:[#allocation10] sm:$0xff] %v571_v27 }
 0x14f   :  { %s905_s15 = scalar_lea.vmem %s617_s6, 128  ;;  %p910_p5 = scmp.lt.s32.totalorder %s617_s6, %s617_s6 }
 0x150   :  { %p906_p4 = scmp.ne.s32.totalorder %s617_s6, %s905_s15  ;;  %p911_p6 = scmp.lt.s32.totalorder %s905_s15, %s905_s15 }
 0x152   :  { %p912_p7 = por %p911_p6, %p910_p5 }
 0x154   :  { %p913_p8 = pnand %p912_p7, %p906_p4 }
 0x156   :  { %916 = shalt.err (!%p913_p8)
}
 0x157   :  { %s917_s17 = scalar_lea.hbm %s1035_s4, 128 }
 0x158   :  { %p918_p9 = scmp.ne.s32.totalorder %s1035_s4, %s917_s17  ;;  %p921_p10 = scmp.lt.u32.totalorder %s917_s17, %s1035_s4 }
 0x15a   :  { %p923_p11 = pnand %p921_p10, %p918_p9 }
 0x15c   :  { %926 = shalt.err (!%p923_p11)
}
 0x15d   :  { %619 = dma.vmem_to_hbm [thread:$0]  %s617_s6, 128, %s1035_s4, [#allocation9]  }
 0x15e   :  { %931 = dma.done.wait [#allocation4], 512  }
 0x15f   :  { %932 = vsyncadd [#allocation4], 4294966784 }
 0x160   :  { %933 = dma.done.wait [#allocation9], 256  }
 0x161   :  { %934 = vsyncadd [#allocation9], 4294967040 }
 0x162   :  { %629 = vsyncpa [#allocation3], 1 }
 0x163   :  { %630 = vsyncpa [#allocation6], 1 }
 0x164   :  { %631 = vsyncpa [#allocation4], 1 }
 0x165   :  { %632 = vsyncpa [#allocation9], 1 }

</bundles_post_ra>
